<compile_context>
chip_gen: v6e
topology: v6e:2x2x1
jax: 0.10.0
libtpu: 0.0.40
codegen_flags: <defaults>
</compile_context>

<pallas_src>
import functools

import jax
import jax.numpy as jnp
import numpy as np
from jax.experimental import pallas as pl
from jax.experimental.pallas import tpu as pltpu

M_MOMENTUM = 0.999   # self.m
T_MOCO = 0.07        # self.T_moco

# Explicit scoped-VMEM ceiling: above the 16/32 MiB defaults (v5e / v6e+),
# comfortably below v7x's 64 MiB physical VMEM.
VMEM_LIMIT_BYTES = 40 * 1024 * 1024
# Per-call double-buffered streaming budget used by the tile pickers.
_STREAM_BUDGET_BYTES = 12 * 1024 * 1024


def _round_up(x, mult):
    return (x + mult - 1) // mult * mult


def _pad_rows(x, n_pad):
    n = x.shape[0]
    if n == n_pad:
        return x
    return jnp.pad(x, ((0, n_pad - n), (0, 0)))


def _pick_din_tile(d_in, fdim, n_pad, budget=_STREAM_BUDGET_BYTES):
    """Largest 128-multiple divisor of d_in whose double-buffered streamed
    footprint (wf_q + wf_k + aliased wf_k_new + xq + xk tiles) fits the
    budget, preferring >=2 grid steps so DMA/compute actually overlap."""
    per_row = 2 * (3 * fdim + 2 * n_pad) * 4          # bytes per d_in row, x2 buffers
    cap = max(128, budget // max(per_row, 1))
    start = (min(cap, d_in) // 128) * 128
    best_single = None
    for cand in range(start, 0, -128):
        if d_in % cand:
            continue
        if best_single is None:
            best_single = cand
        if d_in // cand >= 2:
            return cand
    return best_single if best_single is not None else d_in


def _pick_bank_tile(fdim, k_total, n_pad, budget=_STREAM_BUDGET_BYTES):
    """Lane-dense bank tile: double-buffered bf16 bank tile + f32 output tile
    must fit the budget and leave >=2 grid steps (v7x 2-TC split, pipelining)."""
    for tk in (4096, 2048, 1024, 512, 256, 128):
        if k_total % tk:
            continue
        vmem = 2 * fdim * tk * 2 + 2 * n_pad * tk * 4 + 2 * n_pad * fdim * 4
        if vmem <= budget and k_total // tk >= 2:
            return tk
    return k_total


# ----------------------------------------------------------------------------
# cls_only backbone kernel, tiled over d_in:
#   feats = sum_i x[:, i] @ Wf[i, :] + bf ; logits = feats @ Wc + bc
# ----------------------------------------------------------------------------
def _cls_fwd_kernel(xq_ref, wfq_ref, bfq_ref, wcq_ref, bcq_ref,
                    feats_ref, logits_ref, acc_ref):
    step = pl.program_id(0)

    @pl.when(step == 0)
    def _():
        acc_ref[...] = jnp.zeros_like(acc_ref)

    acc_ref[...] += jnp.dot(xq_ref[...], wfq_ref[...],
                            preferred_element_type=jnp.float32)

    @pl.when(step == pl.num_programs(0) - 1)
    def _():
        feats = acc_ref[...] + bfq_ref[...]
        feats_ref[...] = feats
        logits_ref[...] = jnp.dot(feats, wcq_ref[...],
                                  preferred_element_type=jnp.float32) + bcq_ref[...]


# ----------------------------------------------------------------------------
# Fused forward kernel, tiled over d_in:
#   query matmul-accumulate + EMA of the streamed wf_k block (in place)
#   + key matmul-accumulate; last step: biases, classifier, L2 normalize,
#   EMA of the small bias/classifier params.
# ----------------------------------------------------------------------------
def _fused_fwd_kernel(xq_ref, xk_ref, wfq_ref, wfk_ref,
                      bfq_ref, wcq_ref, bcq_ref, bfk_ref, wck_ref, bck_ref,
                      featsq_ref, logitsq_ref, qn_ref, kn_ref,
                      wfk_new_ref, bfk_new_ref, wck_new_ref, bck_new_ref,
                      accq_ref, acck_ref, *, m):
    step = pl.program_id(0)
    one_m = 1.0 - m

    @pl.when(step == 0)
    def _():
        accq_ref[...] = jnp.zeros_like(accq_ref)
        acck_ref[...] = jnp.zeros_like(acck_ref)

    # EMA of this wf_k block; the block is DMA'd once and reused for both the
    # key matmul and the aliased, in-place HBM writeback (read-before-write
    # within the same grid step).
    wfk_new = wfk_ref[...] * m + wfq_ref[...] * one_m
    wfk_new_ref[...] = wfk_new

    accq_ref[...] += jnp.dot(xq_ref[...], wfq_ref[...],
                             preferred_element_type=jnp.float32)
    acck_ref[...] += jnp.dot(xk_ref[...], wfk_new,
                             preferred_element_type=jnp.float32)

    @pl.when(step == pl.num_programs(0) - 1)
    def _():
        bfk_new = bfk_ref[...] * m + bfq_ref[...] * one_m
        feats_q = accq_ref[...] + bfq_ref[...]
        feats_k = acck_ref[...] + bfk_new

        featsq_ref[...] = feats_q
        logitsq_ref[...] = jnp.dot(feats_q, wcq_ref[...],
                                   preferred_element_type=jnp.float32) + bcq_ref[...]

        # L2 normalize (rsqrt -> EUP slot); eps matches F.normalize(eps=1e-12).
        q_ss = jnp.sum(feats_q * feats_q, axis=1, keepdims=True)
        k_ss = jnp.sum(feats_k * feats_k, axis=1, keepdims=True)
        qn_ref[...] = feats_q * jax.lax.rsqrt(jnp.maximum(q_ss, 1e-24))
        kn_ref[...] = feats_k * jax.lax.rsqrt(jnp.maximum(k_ss, 1e-24))

        # EMA of the small momentum params (pure VPU, negligible).
        bfk_new_ref[...] = bfk_new
        wck_new_ref[...] = wck_ref[...] * m + wcq_ref[...] * one_m
        bck_new_ref[...] = bck_ref[...] * m + bcq_ref[...] * one_m


# ----------------------------------------------------------------------------
# logits_ins kernel: streams the bf16 memory bank over K tiles (parallel grid)
# and folds l_pos into lane 0 of the first tile (the bank's column 0 is zero).
# ----------------------------------------------------------------------------
def _logits_ins_kernel(qn_ref, kn_ref, bank_ref, out_ref, *, inv_t):
    j = pl.program_id(0)
    tile = jnp.dot(qn_ref[...], bank_ref[...].astype(jnp.float32),
                   preferred_element_type=jnp.float32) * inv_t

    @pl.when(j == 0)
    def _():
        l_pos = jnp.sum(qn_ref[...] * kn_ref[...], axis=1, keepdims=True) * inv_t
        lane = jax.lax.broadcasted_iota(jnp.int32, tile.shape, 1)
        out_ref[...] = jnp.where(lane == 0, l_pos, tile)

    @pl.when(j != 0)
    def _():
        out_ref[...] = tile


# ----------------------------------------------------------------------------
# Module-state prep (done ONCE, not per forward): bf16 bank, 128-padded K,
# column 0 reserved (zero) for l_pos.
# ----------------------------------------------------------------------------
def prepare_memory_bank(features):
    fdim, K = features.shape
    k_total = _round_up(1 + K, 128)
    bank = jnp.zeros((fdim, k_total), jnp.bfloat16)
    bank = bank.at[:, 1:1 + K].set(features.astype(jnp.bfloat16))
    return bank, K


def moco_logits_ins(qn, kn, bank, t=T_MOCO):
    n_pad, fdim = qn.shape
    k_total = bank.shape[1]
    tk = _pick_bank_tile(fdim, k_total, n_pad)
    return pl.pallas_call(
        functools.partial(_logits_ins_kernel, inv_t=1.0 / t),
        out_shape=jax.ShapeDtypeStruct((n_pad, k_total), jnp.float32),
        grid=(k_total // tk,),
        in_specs=[
            pl.BlockSpec((n_pad, fdim), lambda j: (0, 0)),   # q, VMEM-resident
            pl.BlockSpec((n_pad, fdim), lambda j: (0, 0)),   # k, VMEM-resident
            pl.BlockSpec((fdim, tk), lambda j: (0, j)),      # bf16 bank tile (streamed)
        ],
        out_specs=pl.BlockSpec((n_pad, tk), lambda j: (0, j)),  # lane-dense tile
        compiler_params=pltpu.CompilerParams(
            dimension_semantics=("parallel",),               # shards across TCs on v7x
            vmem_limit_bytes=VMEM_LIMIT_BYTES),
    )(qn, kn, bank)


# ----------------------------------------------------------------------------
# AdaMoCo.forward
# ----------------------------------------------------------------------------
def adamoco_forward(params_src, params_mom, bank, K, im_q, im_k=None,
                    cls_only=False):
    wf_q, bf_q, wc_q, bc_q = params_src
    d_in, fdim = wf_q.shape
    cdim = wc_q.shape[1]
    n = im_q.shape[0]
    n_pad = max(8, _round_up(n, 8))                 # f32 sublane occupancy

    xq = _pad_rows(im_q.reshape(n, -1), n_pad)      # NCHW -> (n_pad, C*H*W)
    tile_d = _pick_din_tile(d_in, fdim, n_pad)
    grid_d = d_in // tile_d

    bf_q2 = bf_q.reshape(1, -1)
    bc_q2 = bc_q.reshape(1, -1)

    x_spec = pl.BlockSpec((n_pad, tile_d), lambda i: (0, i))
    w_spec = pl.BlockSpec((tile_d, fdim), lambda i: (i, 0))

    def resident(shape):
        return pl.BlockSpec(shape, lambda i: (0, 0))

    if cls_only:
        feats_q, logits_q = pl.pallas_call(
            _cls_fwd_kernel,
            out_shape=(jax.ShapeDtypeStruct((n_pad, fdim), jnp.float32),
                       jax.ShapeDtypeStruct((n_pad, cdim), jnp.float32)),
            grid=(grid_d,),
            in_specs=[x_spec, w_spec,
                      resident((1, fdim)), resident((fdim, cdim)), resident((1, cdim))],
            out_specs=(resident((n_pad, fdim)), resident((n_pad, cdim))),
            scratch_shapes=[pltpu.VMEM((n_pad, fdim), jnp.float32)],
            compiler_params=pltpu.CompilerParams(
                dimension_semantics=("arbitrary",),           # d_in is a reduction
                vmem_limit_bytes=VMEM_LIMIT_BYTES),
        )(xq, wf_q, bf_q2, wc_q, bc_q2)
        return feats_q[:n], logits_q[:n]

    wf_k, bf_k, wc_k, bc_k = params_mom
    xk = _pad_rows(im_k.reshape(n, -1), n_pad)
    bf_k2 = bf_k.reshape(1, -1)
    bc_k2 = bc_k.reshape(1, -1)

    outs = pl.pallas_call(
        functools.partial(_fused_fwd_kernel, m=M_MOMENTUM),
        out_shape=(
            jax.ShapeDtypeStruct((n_pad, fdim), jnp.float32),   # feats_q
            jax.ShapeDtypeStruct((n_pad, cdim), jnp.float32),   # logits_q
            jax.ShapeDtypeStruct((n_pad, fdim), jnp.float32),   # q (normalized)
            jax.ShapeDtypeStruct((n_pad, fdim), jnp.float32),   # k (normalized)
            jax.ShapeDtypeStruct((d_in, fdim), jnp.float32),    # wf_k (EMA'd, aliased)
            jax.ShapeDtypeStruct((1, fdim), jnp.float32),       # bf_k (EMA'd, aliased)
            jax.ShapeDtypeStruct((fdim, cdim), jnp.float32),    # wc_k (EMA'd, aliased)
            jax.ShapeDtypeStruct((1, cdim), jnp.float32),       # bc_k (EMA'd, aliased)
        ),
        grid=(grid_d,),
        in_specs=[
            x_spec, x_spec,                                     # xq, xk (streamed)
            w_spec, w_spec,                                     # wf_q, wf_k (streamed)
            resident((1, fdim)), resident((fdim, cdim)), resident((1, cdim)),
            resident((1, fdim)), resident((fdim, cdim)), resident((1, cdim)),
        ],
        out_specs=(
            resident((n_pad, fdim)), resident((n_pad, cdim)),
            resident((n_pad, fdim)), resident((n_pad, fdim)),
            w_spec,                                             # wf_k_new (streamed)
            resident((1, fdim)), resident((fdim, cdim)), resident((1, cdim)),
        ),
        scratch_shapes=[pltpu.VMEM((n_pad, fdim), jnp.float32),
                        pltpu.VMEM((n_pad, fdim), jnp.float32)],
        # EMA updates the momentum params in place (no extra HBM allocation).
        # NOTE: caller must not reuse the old params_mom arrays afterwards.
        input_output_aliases={3: 4, 7: 5, 8: 6, 9: 7},
        compiler_params=pltpu.CompilerParams(
            dimension_semantics=("arbitrary",),                 # d_in is a reduction
            vmem_limit_bytes=VMEM_LIMIT_BYTES),
    )(xq, xk, wf_q, wf_k, bf_q2, wc_q, bc_q2, bf_k2, wc_k, bc_k2)

    (feats_q, logits_q, qn, kn,
     wf_k_new, bf_k_new, wc_k_new, bc_k_new) = outs

    # logits_ins = [l_pos | l_neg] / T, emitted by one K-tiled parallel kernel;
    # only a narrow slice back to the module's (N, 1+K) shape remains as glue.
    logits_full = moco_logits_ins(qn, kn, bank)
    logits_ins = logits_full[:n, :1 + K]

    params_mom_new = (wf_k_new, bf_k_new.reshape(-1), wc_k_new, bc_k_new.reshape(-1))
    # TODO(synk): the MoCo queue update (update_memory) is module state, not part
    # of forward(); if needed, implement as a separate kernel with
    # input_output_aliases for in-place bank writeback.
    return feats_q[:n], logits_q[:n], logits_ins, kn[:n], params_mom_new


# ----------------------------------------------------------------------------
# Pure-JAX reference (for a correctness sanity check)
# ----------------------------------------------------------------------------
def _ref_forward(params_src, params_mom, mem_for_lneg, im_q, im_k):
    wf, bf, wc, bc = params_src
    n = im_q.shape[0]
    xq = im_q.reshape(n, -1)
    feats_q = xq @ wf + bf
    logits_q = feats_q @ wc + bc
    params_mom_new = tuple(pk * M_MOMENTUM + pq * (1.0 - M_MOMENTUM)
                           for pk, pq in zip(params_mom, params_src))
    wfk, bfk, _, _ = params_mom_new
    xk = im_k.reshape(n, -1)
    feats_k = xk @ wfk + bfk
    q = feats_q / jnp.maximum(jnp.linalg.norm(feats_q, axis=1, keepdims=True), 1e-12)
    k = feats_k / jnp.maximum(jnp.linalg.norm(feats_k, axis=1, keepdims=True), 1e-12)
    l_pos = jnp.sum(q * k, axis=1, keepdims=True)
    l_neg = q @ mem_for_lneg
    logits_ins = jnp.concatenate([l_pos, l_neg], axis=1) / T_MOCO
    return feats_q, logits_q, logits_ins, k, params_mom_new


if __name__ == "__main__":
    # Small shapes consistent with the module's forward.
    N, C, H, W = 2, 4, 16, 16
    D_IN = C * H * W                 # 1024
    FEATURES_LENGTH = 32
    NUM_CLASSES = 8
    DATASET_LENGTH = 128
    K = min(16384, DATASET_LENGTH)   # self.K

    key = jax.random.PRNGKey(0)
    keys = jax.random.split(key, 8)

    # Deterministic synthetic backbone parameters (src + momentum copies).
    wf_q = jax.random.normal(keys[0], (D_IN, FEATURES_LENGTH), jnp.float32) * 0.02
    bf_q = jax.random.normal(keys[1], (FEATURES_LENGTH,), jnp.float32) * 0.02
    wc_q = jax.random.normal(keys[2], (FEATURES_LENGTH, NUM_CLASSES), jnp.float32) * 0.02
    bc_q = jax.random.normal(keys[3], (NUM_CLASSES,), jnp.float32) * 0.02
    params_src = (wf_q, bf_q, wc_q, bc_q)

    wf_k = wf_q + jax.random.normal(keys[4], wf_q.shape, jnp.float32) * 0.01
    bf_k = bf_q + 0.01
    wc_k = wc_q + 0.01
    bc_k = bc_q + 0.01
    params_mom = (wf_k, bf_k, wc_k, bc_k)

    # register_buffer('features', randn(features_length, K)); F.normalize(dim=0)
    mem = jax.random.normal(keys[5], (FEATURES_LENGTH, K), jnp.float32)
    mem = mem / jnp.maximum(jnp.linalg.norm(mem, axis=0, keepdims=True), 1e-12)
    # One-time module-state prep: bf16 bank, padded K, l_pos slot at column 0.
    bank, K_eff = prepare_memory_bank(mem)

    im_q = jax.random.normal(keys[6], (N, C, H, W), jnp.float32)
    im_k = jax.random.normal(keys[7], (N, C, H, W), jnp.float32)

    # Reference first (the fused kernel donates the momentum-param buffers).
    # The bank is deliberately stored in bf16, so the reference uses the
    # bf16-quantized bank values for l_neg.
    mem_quant = bank[:, 1:1 + K].astype(jnp.float32)
    r_feats, r_logits, r_ins, r_k, r_mom = _ref_forward(
        params_src, params_mom, mem_quant, im_q, im_k)

    # cls_only path.
    feats_c, logits_c = adamoco_forward(params_src, params_mom, bank, K_eff,
                                        im_q, cls_only=True)

    # Full forward path.
    feats_q, logits_q, logits_ins, k_out, params_mom_new = adamoco_forward(
        params_src, params_mom, bank, K_eff, im_q, im_k)
    jax.block_until_ready((feats_q, logits_q, logits_ins, k_out, params_mom_new,
                           feats_c, logits_c))

    # MXU matmuls use TPU default precision (bf16-pass decomposition for f32),
    # so activation tolerances are a little looser than the EMA (pure VPU) ones.
    RT, AT = 5e-3, 5e-3
    np.testing.assert_allclose(np.asarray(feats_c), np.asarray(r_feats), rtol=RT, atol=AT)
    np.testing.assert_allclose(np.asarray(logits_c), np.asarray(r_logits), rtol=RT, atol=AT)
    np.testing.assert_allclose(np.asarray(feats_q), np.asarray(r_feats), rtol=RT, atol=AT)
    np.testing.assert_allclose(np.asarray(logits_q), np.asarray(r_logits), rtol=RT, atol=AT)
    np.testing.assert_allclose(np.asarray(logits_ins), np.asarray(r_ins), rtol=RT, atol=AT)
    np.testing.assert_allclose(np.asarray(k_out), np.asarray(r_k), rtol=RT, atol=AT)
    for p_got, p_exp in zip(params_mom_new, r_mom):
        np.testing.assert_allclose(np.asarray(p_got), np.asarray(p_exp),
                                   rtol=1e-5, atol=1e-6)

    assert logits_ins.shape == (N, 1 + K)
    print("KERNEL_OK")
</pallas_src>

<mosaic_0001>
module attributes {stable_mosaic.version = 11 : i64} {
  func.func @_cls_fwd_kernel(%arg0: i32, %arg1: memref<8x512xf32, #tpu.memory_space<vmem>>, %arg2: memref<512x32xf32, #tpu.memory_space<vmem>>, %arg3: memref<1x32xf32, #tpu.memory_space<vmem>>, %arg4: memref<32x8xf32, #tpu.memory_space<vmem>>, %arg5: memref<1x8xf32, #tpu.memory_space<vmem>>, %arg6: memref<8x32xf32, #tpu.memory_space<vmem>>, %arg7: memref<8x8xf32, #tpu.memory_space<vmem>>, %arg8: memref<8x32xf32, #tpu.memory_space<vmem>>) attributes {dimension_semantics = [#tpu.dimension_semantics<arbitrary>], iteration_bounds = array<i64: 2>, scalar_prefetch = 0 : i64, scratch_operands = 1 : i64, tpu.core_type = #tpu.core_type<tc>, window_params = [{transform_indices = @transform_0, window_bounds = array<i64: 8, 512>}, {transform_indices = @transform_1, window_bounds = array<i64: 512, 32>}, {pipeline_mode = #tpu.pipeline_mode<synchronous>, transform_indices = @transform_2, window_bounds = array<i64: 1, 32>}, {pipeline_mode = #tpu.pipeline_mode<synchronous>, transform_indices = @transform_3, window_bounds = array<i64: 32, 8>}, {pipeline_mode = #tpu.pipeline_mode<synchronous>, transform_indices = @transform_4, window_bounds = array<i64: 1, 8>}, {pipeline_mode = #tpu.pipeline_mode<synchronous>, transform_indices = @transform_5, window_bounds = array<i64: 8, 32>}, {pipeline_mode = #tpu.pipeline_mode<synchronous>, transform_indices = @transform_6, window_bounds = array<i64: 8, 8>}]} {
    %c0_i32 = arith.constant 0 : i32
    %0 = arith.cmpi eq, %arg0, %c0_i32 : i32
    %1 = arith.extui %0 : i1 to i32
    %c0_i32_0 = arith.constant 0 : i32
    %2 = arith.cmpi ne, %1, %c0_i32_0 : i32
    scf.if %2 {
      %cst_9 = arith.constant 0.000000e+00 : f32
      %12 = vector.broadcast %cst_9 : f32 to vector<8x32xf32>
      %c0_10 = arith.constant 0 : index
      %c0_11 = arith.constant 0 : index
      %13 = vector.load %arg8[%c0_10, %c0_11] : memref<8x32xf32, #tpu.memory_space<vmem>>, vector<8x32xf32>
      tpu.vector_store %arg8[%c0_10, %c0_11], %12 {strides = array<i32>} : memref<8x32xf32, #tpu.memory_space<vmem>>, vector<8x32xf32>,
    } else {
    }
    %c0 = arith.constant 0 : index
    %c0_1 = arith.constant 0 : index
    %3 = vector.load %arg8[%c0, %c0_1] : memref<8x32xf32, #tpu.memory_space<vmem>>, vector<8x32xf32>
    %c0_2 = arith.constant 0 : index
    %c0_3 = arith.constant 0 : index
    %4 = vector.load %arg1[%c0_2, %c0_3] : memref<8x512xf32, #tpu.memory_space<vmem>>, vector<8x512xf32>
    %c0_4 = arith.constant 0 : index
    %c0_5 = arith.constant 0 : index
    %5 = vector.load %arg2[%c0_4, %c0_5] : memref<512x32xf32, #tpu.memory_space<vmem>>, vector<512x32xf32>
    %cst = arith.constant dense<0.000000e+00> : vector<8x32xf32>
    %6 = tpu.matmul %4, %5, %cst {dimension_numbers = #tpu.dot_dimension_numbers<[1], [0], [0], [1], [0, 0, 1, 1], [], []>} : vector<8x512xf32>, vector<512x32xf32>, vector<8x32xf32> -> vector<8x32xf32>
    %7 = arith.addf %3, %6 : vector<8x32xf32>
    %c0_6 = arith.constant 0 : index
    %c0_7 = arith.constant 0 : index
    %8 = vector.load %arg8[%c0_6, %c0_7] : memref<8x32xf32, #tpu.memory_space<vmem>>, vector<8x32xf32>
    tpu.vector_store %arg8[%c0_6, %c0_7], %7 {strides = array<i32>} : memref<8x32xf32, #tpu.memory_space<vmem>>, vector<8x32xf32>,
    %c1_i32 = arith.constant 1 : i32
    %9 = arith.cmpi eq, %arg0, %c1_i32 : i32
    %10 = arith.extui %9 : i1 to i32
    %c0_i32_8 = arith.constant 0 : i32
    %11 = arith.cmpi ne, %10, %c0_i32_8 : i32
    scf.if %11 {
      %c0_9 = arith.constant 0 : index
      %c0_10 = arith.constant 0 : index
      %12 = vector.load %arg8[%c0_9, %c0_10] : memref<8x32xf32, #tpu.memory_space<vmem>>, vector<8x32xf32>
      %c0_11 = arith.constant 0 : index
      %c0_12 = arith.constant 0 : index
      %13 = vector.load %arg3[%c0_11, %c0_12] : memref<1x32xf32, #tpu.memory_space<vmem>>, vector<1x32xf32>
      %14 = vector.broadcast %13 : vector<1x32xf32> to vector<8x32xf32>
      %15 = arith.addf %12, %14 : vector<8x32xf32>
      %c0_13 = arith.constant 0 : index
      %c0_14 = arith.constant 0 : index
      %16 = vector.load %arg6[%c0_13, %c0_14] : memref<8x32xf32, #tpu.memory_space<vmem>>, vector<8x32xf32>
      tpu.vector_store %arg6[%c0_13, %c0_14], %15 {strides = array<i32>} : memref<8x32xf32, #tpu.memory_space<vmem>>, vector<8x32xf32>,
      %c0_15 = arith.constant 0 : index
      %c0_16 = arith.constant 0 : index
      %17 = vector.load %arg4[%c0_15, %c0_16] : memref<32x8xf32, #tpu.memory_space<vmem>>, vector<32x8xf32>
      %cst_17 = arith.constant dense<0.000000e+00> : vector<8x8xf32>
      %18 = tpu.matmul %15, %17, %cst_17 {dimension_numbers = #tpu.dot_dimension_numbers<[1], [0], [0], [1], [0, 0, 1, 1], [], []>} : vector<8x32xf32>, vector<32x8xf32>, vector<8x8xf32> -> vector<8x8xf32>
      %c0_18 = arith.constant 0 : index
      %c0_19 = arith.constant 0 : index
      %19 = vector.load %arg5[%c0_18, %c0_19] : memref<1x8xf32, #tpu.memory_space<vmem>>, vector<1x8xf32>
      %20 = vector.broadcast %19 : vector<1x8xf32> to vector<8x8xf32>
      %21 = arith.addf %18, %20 : vector<8x8xf32>
      %c0_20 = arith.constant 0 : index
      %c0_21 = arith.constant 0 : index
      %22 = vector.load %arg7[%c0_20, %c0_21] : memref<8x8xf32, #tpu.memory_space<vmem>>, vector<8x8xf32>
      tpu.vector_store %arg7[%c0_20, %c0_21], %21 {strides = array<i32>} : memref<8x8xf32, #tpu.memory_space<vmem>>, vector<8x8xf32>,
    } else {
    }
    return
  }
  func.func @transform_0(%arg0: i32) -> (i32, i32) {
    %c0_i32 = arith.constant 0 : i32
    %c0_i32_0 = arith.constant 0 : i32
    return %c0_i32, %arg0 : i32, i32
  }
  func.func @transform_1(%arg0: i32) -> (i32, i32) {
    %c0_i32 = arith.constant 0 : i32
    %c0_i32_0 = arith.constant 0 : i32
    return %arg0, %c0_i32 : i32, i32
  }
  func.func @transform_2(%arg0: i32) -> (i32, i32) {
    %c0_i32 = arith.constant 0 : i32
    %c0_i32_0 = arith.constant 0 : i32
    %c0_i32_1 = arith.constant 0 : i32
    return %c0_i32, %c0_i32_0 : i32, i32
  }
  func.func @transform_3(%arg0: i32) -> (i32, i32) {
    %c0_i32 = arith.constant 0 : i32
    %c0_i32_0 = arith.constant 0 : i32
    %c0_i32_1 = arith.constant 0 : i32
    return %c0_i32, %c0_i32_0 : i32, i32
  }
  func.func @transform_4(%arg0: i32) -> (i32, i32) {
    %c0_i32 = arith.constant 0 : i32
    %c0_i32_0 = arith.constant 0 : i32
    %c0_i32_1 = arith.constant 0 : i32
    return %c0_i32, %c0_i32_0 : i32, i32
  }
  func.func @transform_5(%arg0: i32) -> (i32, i32) {
    %c0_i32 = arith.constant 0 : i32
    %c0_i32_0 = arith.constant 0 : i32
    %c0_i32_1 = arith.constant 0 : i32
    return %c0_i32, %c0_i32_0 : i32, i32
  }
  func.func @transform_6(%arg0: i32) -> (i32, i32) {
    %c0_i32 = arith.constant 0 : i32
    %c0_i32_0 = arith.constant 0 : i32
    %c0_i32_1 = arith.constant 0 : i32
    return %c0_i32, %c0_i32_0 : i32, i32
  }
}

</mosaic_0001>

<bundles_post_ra>
// kernel: tpu_custom_call.1
= control target key start
LH: loop header
LB: loop body
LE: loop exit
PB: predicated region body
PF: predicated region fallthrough
CT: control target
= control target key end

     0   :  { %12 = vsyncpa [#allocation4], 0  ;;  %s1032_s0 = inlined_call_operand.vmem [shape: f32[8,1024], index: 0, kind: input, shape index: {}]   ;;  %s1033_s1 = inlined_call_operand.vmem [shape: f32[1024,32], index: 1, kind: input, shape index: {}]   ;;  %s1034_s2 = inlined_call_operand.vmem [shape: f32[1,32], index: 2, kind: input, shape index: {}]   ;;  %s1035_s3 = inlined_call_operand.vmem [shape: f32[32,8], index: 3, kind: input, shape index: {}]   ;;  %s1036_s4 = inlined_call_operand.vmem [shape: f32[1,8], index: 4, kind: input, shape index: {}]   ;;  %s1037_s5 = inlined_call_operand.hbm [shape: f32[8,32], index: 5, kind: output, shape index: {0}]   ;;  %s1038_s6 = inlined_call_operand.hbm [shape: f32[8,8], index: 6, kind: output, shape index: {1}]  }
   0x1   :  { %13 = vsyncpa [#allocation6], 0  ;;  %s893_s21 = smov 0  }
   0x2 LB: > { %s899_s22 = sadd.s32 4294967295, %s851_s21   ;;  %p662_p0 = scmp.ge.s32.totalorder %s851_s21, 1  ;;  %s851_s21 = sphi %s893_s21, %s19_s21  }
   0x3   : > { %p219_p1 = scmp.lt.s32.totalorder %s851_s21, 3 }
   0x5   : > { %p220_p2 = pnand %p662_p0, %p219_p1 }
   0x6   : > { %s663_s23 = sshll.u32 (!%p220_p2), %s899_s22, 2  ;;  %s665_s24 = sshll.u32 (!%p220_p2), %s899_s22, 6 }
   0x7   : > { %223 = sbr.rel (%p220_p2) target bundleno = 493 (0x1ed), region = 40  ;;  %p250_p3 = scmp.lt.s32.totalorder (!%p220_p2), %s663_s23, 7 }
   0x8   : > { %p256_p4 = scmp.lt.s32.totalorder (!%p220_p2), %s665_s24, 127  ;;  %p667_p5 = scmp.ne.s32.totalorder (!%p220_p2), %s899_s22, 0 }
   0xc   : > { %s1040_s23 = smov (!%p250_p3, %s663_s23), 7  ;;  %s1042_s24 = smov (!%p256_p4, %s665_s24), 127 }
   0xd   : > { %s664_s25 = sshll.u32 %s1040_s23, 3  ;;  %s666_s29 = sshll.u32 %s1042_s24, 3 }
   0xe   : > { %s908_s28 = scalar_lea.vmem %s1032_s0, %s664_s25  ;;  %s913_s8 = scalar_lea.vmem %s1033_s1, %s666_s29 }
   0xf   : > { %264 = sbr.rel (%p667_p5) target bundleno = 22 (0x16), region = 44 }
  0x14   : > { %vm265_vm0 = vcmask 261120   ;;  %v853_v0 = vmov 0.0  }
  0x15   : > { %266 = vst.msk [vmem:[#allocation2] sm:$0xff] %vm265_vm0, %v853_v0 }
  0x16 PF: > { %v303_v1 = vld [vmem:[%s913_s8 + $0xf8] sm:$0xff]  ;;  %v302_v5 = vld [vmem:[%s913_s8 + $0xf0] sm:$0xff]  ;;  %v301_v9 = vld [vmem:[%s913_s8 + $0xe8] sm:$0xff]  ;;  %vm477_vm1 = vcmask 261120   ;;  %p668_p6 = scmp.ne.s32.totalorder %s899_s22, 1 }
  0x17   : > { %v335_v2 = vld [vmem:[%s913_s8 + $0x1f8] sm:$0xff]  ;;  %678 = vmatprep.subr.mxu0 %v303_v1  ;;  %v334_v6 = vld [vmem:[%s913_s8 + $0x1f0] sm:$0xff]  ;;  %v333_v10 = vld [vmem:[%s913_s8 + $0x1e8] sm:$0xff] }
  0x18   : > { %v287_v3 = vld [vmem:[%s913_s8 + $0x78] sm:$0xff]  ;;  %713 = vmatprep.subr.mxu1 %v335_v2  ;;  %v286_v7 = vld [vmem:[%s913_s8 + $0x70] sm:$0xff]  ;;  %v285_v11 = vld [vmem:[%s913_s8 + $0x68] sm:$0xff] }
  0x19   : > { %v319_v4 = vld [vmem:[%s913_s8 + $0x178] sm:$0xff]  ;;  %679 = vmatpush3.msra.mxu0 %v287_v3  ;;  %v318_v8 = vld [vmem:[%s913_s8 + $0x170] sm:$0xff]  ;;  %v317_v12 = vld [vmem:[%s913_s8 + $0x168] sm:$0xff] }
  0x1a   : > { %714 = vmatpush3.msra.mxu1 %v319_v4  ;;  %680 = vmatprep.subr.mxu0 %v302_v5  ;;  %v300_v13 = vld [vmem:[%s913_s8 + $0xe0] sm:$0xff]  ;;  %v299_v17 = vld [vmem:[%s913_s8 + $0xd8] sm:$0xff]  ;;  %v298_v21 = vld [vmem:[%s913_s8 + $0xd0] sm:$0xff] }
  0x1b   : > { %715 = vmatprep.subr.mxu1 %v334_v6  ;;  %681 = vmatpush3.msra.mxu0 %v286_v7  ;;  %v332_v14 = vld [vmem:[%s913_s8 + $0x1e0] sm:$0xff]  ;;  %v331_v18 = vld [vmem:[%s913_s8 + $0x1d8] sm:$0xff]  ;;  %v330_v22 = vld [vmem:[%s913_s8 + $0x1d0] sm:$0xff] }
  0x1c   : > { %716 = vmatpush3.msra.mxu1 %v318_v8  ;;  %682 = vmatprep.subr.mxu0 %v301_v9  ;;  %v284_v15 = vld [vmem:[%s913_s8 + $0x60] sm:$0xff]  ;;  %v283_v19 = vld [vmem:[%s913_s8 + $0x58] sm:$0xff]  ;;  %v282_v23 = vld [vmem:[%s913_s8 + $0x50] sm:$0xff] }
  0x1d   : > { %717 = vmatprep.subr.mxu1 %v333_v10  ;;  %v316_v16 = vld [vmem:[%s913_s8 + $0x160] sm:$0xff]  ;;  %683 = vmatpush3.msra.mxu0 %v285_v11  ;;  %v315_v20 = vld [vmem:[%s913_s8 + $0x158] sm:$0xff]  ;;  %v314_v24 = vld [vmem:[%s913_s8 + $0x150] sm:$0xff] }
  0x1e   : > { %718 = vmatpush3.msra.mxu1 %v317_v12  ;;  %684 = vmatprep.subr.mxu0 %v300_v13  ;;  %v297_v25 = vld [vmem:[%s913_s8 + $0xc8] sm:$0xff]  ;;  %v296_v29 = vld [vmem:[%s913_s8 + $0xc0] sm:$0xff]  ;;  %v295_v33 = vld [vmem:[%s913_s8 + $0xb8] sm:$0xff] }
  0x1f   : > { %719 = vmatprep.subr.mxu1 %v332_v14  ;;  %685 = vmatpush3.msra.mxu0 %v284_v15  ;;  %v329_v26 = vld [vmem:[%s913_s8 + $0x1c8] sm:$0xff]  ;;  %v328_v30 = vld [vmem:[%s913_s8 + $0x1c0] sm:$0xff]  ;;  %v327_v34 = vld [vmem:[%s913_s8 + $0x1b8] sm:$0xff] }
  0x20   : > { %720 = vmatpush3.msra.mxu1 %v316_v16  ;;  %686 = vmatprep.subr.mxu0 %v299_v17  ;;  %v281_v27 = vld [vmem:[%s913_s8 + $0x48] sm:$0xff]  ;;  %v280_v31 = vld [vmem:[%s913_s8 + $0x40] sm:$0xff]  ;;  %v279_v35 = vld [vmem:[%s913_s8 + $0x38] sm:$0xff] }
  0x21   : > { %721 = vmatprep.subr.mxu1 %v331_v18  ;;  %687 = vmatpush3.msra.mxu0 %v283_v19  ;;  %v313_v28 = vld [vmem:[%s913_s8 + $0x148] sm:$0xff]  ;;  %v312_v32 = vld [vmem:[%s913_s8 + $0x140] sm:$0xff]  ;;  %v311_v36 = vld [vmem:[%s913_s8 + $0x138] sm:$0xff] }
  0x22   : > { %722 = vmatpush3.msra.mxu1 %v315_v20  ;;  %688 = vmatprep.subr.mxu0 %v298_v21  ;;  %v294_v37 = vld [vmem:[%s913_s8 + $0xb0] sm:$0xff]  ;;  %v293_v41 = vld [vmem:[%s913_s8 + $0xa8] sm:$0xff]  ;;  %v292_v45 = vld [vmem:[%s913_s8 + $0xa0] sm:$0xff] }
  0x23   : > { %723 = vmatprep.subr.mxu1 %v330_v22  ;;  %689 = vmatpush3.msra.mxu0 %v282_v23  ;;  %v326_v38 = vld [vmem:[%s913_s8 + $0x1b0] sm:$0xff]  ;;  %v325_v42 = vld [vmem:[%s913_s8 + $0x1a8] sm:$0xff]  ;;  %v324_v46 = vld [vmem:[%s913_s8 + $0x1a0] sm:$0xff] }
  0x24   : > { %724 = vmatpush3.msra.mxu1 %v314_v24  ;;  %690 = vmatprep.subr.mxu0 %v297_v25  ;;  %v278_v39 = vld [vmem:[%s913_s8 + $0x30] sm:$0xff]  ;;  %v277_v43 = vld [vmem:[%s913_s8 + $0x28] sm:$0xff]  ;;  %v276_v47 = vld [vmem:[%s913_s8 + $0x20] sm:$0xff] }
  0x25   : > { %725 = vmatprep.subr.mxu1 %v329_v26  ;;  %691 = vmatpush3.msra.mxu0 %v281_v27  ;;  %v310_v40 = vld [vmem:[%s913_s8 + $0x130] sm:$0xff]  ;;  %v309_v44 = vld [vmem:[%s913_s8 + $0x128] sm:$0xff]  ;;  %v308_v48 = vld [vmem:[%s913_s8 + $0x120] sm:$0xff] }
  0x26   : > { %726 = vmatpush3.msra.mxu1 %v313_v28  ;;  %692 = vmatprep.subr.mxu0 %v296_v29  ;;  %v291_v49 = vld [vmem:[%s913_s8 + $0x98] sm:$0xff]  ;;  %v290_v53 = vld [vmem:[%s913_s8 + $0x90] sm:$0xff]  ;;  %v289_v57 = vld [vmem:[%s913_s8 + $0x88] sm:$0xff] }
  0x27   : > { %727 = vmatprep.subr.mxu1 %v328_v30  ;;  %693 = vmatpush3.msra.mxu0 %v280_v31  ;;  %v323_v50 = vld [vmem:[%s913_s8 + $0x198] sm:$0xff]  ;;  %v322_v54 = vld [vmem:[%s913_s8 + $0x190] sm:$0xff]  ;;  %v321_v58 = vld [vmem:[%s913_s8 + $0x188] sm:$0xff] }
  0x28   : > { %728 = vmatpush3.msra.mxu1 %v312_v32  ;;  %694 = vmatprep.subr.mxu0 %v295_v33  ;;  %v275_v51 = vld [vmem:[%s913_s8 + $0x18] sm:$0xff]  ;;  %v274_v55 = vld [vmem:[%s913_s8 + $0x10] sm:$0xff]  ;;  %v273_v59 = vld [vmem:[%s913_s8 + $0x8] sm:$0xff] }
  0x29   : > { %729 = vmatprep.subr.mxu1 %v327_v34  ;;  %695 = vmatpush3.msra.mxu0 %v279_v35  ;;  %v307_v52 = vld [vmem:[%s913_s8 + $0x118] sm:$0xff]  ;;  %v306_v56 = vld [vmem:[%s913_s8 + $0x110] sm:$0xff]  ;;  %v305_v60 = vld [vmem:[%s913_s8 + $0x108] sm:$0xff] }
  0x2a   : > { %730 = vmatpush3.msra.mxu1 %v311_v36  ;;  %696 = vmatprep.subr.mxu0 %v294_v37  ;;  %v288_v61 = vld [vmem:[%s913_s8 + $0x80] sm:$0xff]  ;;  %v269_v0 = vld [vmem:[%s908_s28 + $0x8] sm:$0xff]  ;;  %v271_v2 = vld [vmem:[%s908_s28 + $0x18] sm:$0xff] }
  0x2b   : > { %731 = vmatprep.subr.mxu1 %v326_v38  ;;  %697 = vmatpush3.msra.mxu0 %v278_v39  ;;  %v320_v62 = vld [vmem:[%s913_s8 + $0x180] sm:$0xff]  ;;  %v270_v4 = vld [vmem:[%s908_s28 + $0x10] sm:$0xff] }
  0x2c   : > { %732 = vmatpush3.msra.mxu1 %v310_v40  ;;  %698 = vmatprep.subr.mxu0 %v293_v41  ;;  %v272_v63 = vld [vmem:[%s913_s8] sm:$0xff] }
  0x2d   : > { %733 = vmatprep.subr.mxu1 %v325_v42  ;;  %699 = vmatpush3.msra.mxu0 %v277_v43  ;;  %v304_v1 = vld [vmem:[%s913_s8 + $0x100] sm:$0xff] }
  0x2e   : > { %734 = vmatpush3.msra.mxu1 %v309_v44  ;;  %700 = vmatprep.subr.mxu0 %v292_v45  ;;  %v268_v3 = vld [vmem:[%s908_s28] sm:$0xff] }
  0x2f   : > { %735 = vmatprep.subr.mxu1 %v324_v46  ;;  %701 = vmatpush3.msra.mxu0 %v276_v47  ;;  %v267_v11 = vld [vmem:[#allocation2] sm:$0xff] }
  0x30   : > { %736 = vmatpush3.msra.mxu1 %v308_v48  ;;  %702 = vmatprep.subr.mxu0 %v291_v49 }
  0x31   : > { %737 = vmatprep.subr.mxu1 %v323_v50  ;;  %703 = vmatpush3.msra.mxu0 %v275_v51 }
  0x32   : > { %738 = vmatpush3.msra.mxu1 %v307_v52  ;;  %704 = vmatprep.subr.mxu0 %v290_v53 }
  0x33   : > { %739 = vmatprep.subr.mxu1 %v322_v54  ;;  %705 = vmatpush3.msra.mxu0 %v274_v55 }
  0x34   : > { %740 = vmatpush3.msra.mxu1 %v306_v56  ;;  %706 = vmatprep.subr.mxu0 %v289_v57 }
  0x35   : > { %741 = vmatprep.subr.mxu1 %v321_v58  ;;  %707 = vmatpush3.msra.mxu0 %v273_v59 }
  0x36   : > { %742 = vmatpush3.msra.mxu1 %v305_v60  ;;  %708 = vmatprep.subr.mxu0 %v288_v61 }
  0x37   : > { %743 = vmatprep.subr.mxu1 %v320_v62  ;;  %709 = vmatpush3.msra.mxu0 %v272_v63 }
  0x38   : > { %400 = vmatprep.mubr.f32.mxu0 %v269_v0  ;;  %744 = vmatpush3.msra.mxu1 %v304_v1 }
  0x39   : > { %470 = vmatprep.mubr.f32.mxu1 %v271_v2  ;;  %401 = vmatmul.mubr.f32.vlgmr.msra.gmra.mxu0 %v268_v3 }
  0x3a   : > { %471 = vmatmul.mubr.f32.vlgmr.msra.gmra.mxu1 %v270_v4 }
  0xf9   : > { %v710_v5 = vpop.f32.mrf.mxu0 }
  0xfa   : > { %v745_v6 = vpop.f32.mrf.mxu1 }
  0xfb   : > { %v711_v7 = vpop.f32.mrf.mxu0 }
  0xfc   : > { %v746_v8 = vpop.f32.mrf.mxu1  ;;  %v712_v9 = vadd.f32 %v711_v7, %v710_v5 }
  0xfd   : > { %v747_v10 = vadd.f32 %v746_v8, %v745_v6 }
  0xff   : > { %v473_v12 = vadd.f32 %v747_v10, %v712_v9  ;;  %482 = sbr.rel (%p668_p6) target bundleno = 465 (0x1d1), region = 48 }
 0x101   : > { %v476_v13 = vadd.f32 %v473_v12, %v267_v11 }
 0x103   : > { %478 = vst.msk [vmem:[#allocation2] sm:$0xff] %vm477_vm1, %v476_v13 }
 0x104   : > { %v496_v14 = vld [vmem:[%s1035_s3 + $0x18] sm:$0xff]  ;;  %v854_v15 = vmov 0.0   ;;  %v495_v16 = vld [vmem:[%s1035_s3 + $0x10] sm:$0xff]  ;;  %vm855_vm2 = vmmov 0   ;;  %v669_v18 = vld [vmem:[%s1034_s2] ss:$0 sm:$0xff] }
 0x105   : > { %753 = vmatprep.subr.mxu0 %v854_v15  ;;  %761 = vmatprep.mubr.msk.f32.mxu0 %vm855_vm2, %v854_v15  ;;  %v494_v20 = vld [vmem:[%s1035_s3 + $0x8] sm:$0xff]  ;;  %v493_v21 = vld [vmem:[%s1035_s3] sm:$0xff]  ;;  %vm577_vm3 = vcmask 64512  }
 0x106   : > { %754 = vmatpush3.msra.mxu0 %v496_v14  ;;  %v670_v22 = vld [vmem:[%s1036_s4] ss:$0 sm:$0xff] }
 0x107   : > { %755 = vmatprep.subr.mxu0 %v854_v15 }
 0x108   : > { %756 = vmatpush3.msra.mxu0 %v495_v16 }
 0x109   : > { %757 = vmatprep.subr.mxu0 %v854_v15 }
 0x10a   : > { %v483_v17 = vld [vmem:[#allocation2] sm:$0xff]  ;;  %758 = vmatpush3.msra.mxu0 %v494_v20 }
 0x10b   : > { %v491_v19 = vadd.f32 %v669_v18, %v483_v17  ;;  %759 = vmatprep.subr.mxu0 %v854_v15 }
 0x10c   : > { %760 = vmatpush3.msra.mxu0 %v493_v21 }
 0x10d   : > { %492 = vst.msk [vmem:[#allocation3] sm:$0xff] %vm477_vm1, %v491_v19  ;;  %762 = vmatmul.mubr.msk.f32.vlgmr.msra.gmra.mxu0 %vm477_vm1, %v491_v19 }
 0x1cd   : > { %v573_v23 = vpop.f32.mrf.mxu0 }
 0x1ce   : > { %v574_v24 = vadd.f32 %v670_v22, %v573_v23 }
 0x1cf   : > { %v763_v25 = vpop.f32.mrf.mxu0 }
 0x1d0   : > { %578 = vst.msk [vmem:[#allocation5] sm:$0xff] %vm577_vm3, %v574_v24 }
 0x1d1 PF: > { %p772_p7 = scmp.eq.s32.totalorder %s899_s22, 1  ;;  %s856_s23 = smov [#allocation3]  }
 0x1d2   : > { %s586_s24 = sshll.u32 %s856_s23, 4  ;;  %s857_s25 = smov [#allocation5]   ;;  %s587_s24 = int_to_ptr.vmem [resolvable:$true] %s586_s24 }
 0x1d3   : > { %s597_s26 = sshll.u32 %s857_s25, 4  ;;  %s789_s27 = scalar_lea.vmem %s587_s24, 128  ;;  %s598_s26 = int_to_ptr.vmem [resolvable:$true] %s597_s26 }
 0x1d4   : > { %p790_p8 = scmp.ne.s32.totalorder %s587_s24, %s789_s27  ;;  %p796_p11 = scmp.lt.s32.totalorder %s587_s24, %s587_s24 }
 0x1d5   : > { %p797_p12 = scmp.lt.s32.totalorder %s789_s27, %s789_s27 }
 0x1d6   : > { %p791_p9 = pnand %p790_p8, %p772_p7 }
 0x1d7   : > { %p798_p13 = por %p797_p12, %p796_p11 }
 0x1d8   : > { %p792_p10 = pneg %p791_p9 }
 0x1da   : > { %p799_p0 = pnand %p798_p13, %p792_p10 }
 0x1dc   : > { %802 = shalt.err (!%p799_p0)
}
 0x1dd   : > { %765 = dma.vmem_to_hbm [thread:$0]  (%p772_p7), %s587_s24, 128, %s1037_s5, [#allocation4]  }
 0x1de   : > { %s813_s30 = scalar_lea.vmem %s598_s26, 128  ;;  %p820_p4 = scmp.lt.s32.totalorder %s598_s26, %s598_s26 }
 0x1df   : > { %p814_p1 = scmp.ne.s32.totalorder %s598_s26, %s813_s30  ;;  %p821_p5 = scmp.lt.s32.totalorder %s813_s30, %s813_s30 }
 0x1e1   : > { %p815_p2 = pnand %p814_p1, %p772_p7  ;;  %p822_p6 = por %p821_p5, %p820_p4 }
 0x1e3   : > { %p816_p3 = pneg %p815_p2 }
 0x1e5   : > { %p823_p8 = pnand %p822_p6, %p816_p3 }
 0x1e7   : > { %826 = shalt.err (!%p823_p8)
}
 0x1e8   : > { %767 = dma.vmem_to_hbm [thread:$0]  (%p772_p7), %s598_s26, 128, %s1038_s6, [#allocation6]  }
 0x1e9   : > { %842 = dma.done.wait (%p772_p7), [#allocation4], 128  }
 0x1ea   : > { %844 = vsyncadd (%p772_p7), [#allocation4], 4294967168 }
 0x1eb   : > { %846 = dma.done.wait (%p772_p7), [#allocation6], 128  }
 0x1ec   : > { %848 = vsyncadd (%p772_p7), [#allocation6], 4294967168 }
 0x1ed PF: > { %s19_s21 = sadd.s32 1, %s851_s21  }
 0x1ee   : > { %p16_p9 = scmp.ge.s32.totalorder %s19_s21, 4  }
 0x1f0   :  { %18 = sbr.rel (!%p16_p9) target bundleno = 2 (0x2), region = 86 }
 0x1f5   :  { %614 = vsyncpa [#allocation4], 1 }
 0x1f6   :  { %616 = vsyncpa [#allocation4 + $0x1], 1 }
 0x1f7   :  { %617 = vsyncpa [#allocation6], 1 }

</bundles_post_ra>
